<compile_context>
chip_gen: v7x
topology: tpu7x:2x2x1
jax: 0.10.0
libtpu: 0.0.40
codegen_flags: <defaults>
</compile_context>

<pallas_src>
import functools

import jax
import jax.numpy as jnp
import numpy as np
from jax.experimental import pallas as pl
from jax.experimental.pallas import tpu as pltpu

_LANES = 128
_SUBLANES = 8
_TILE_M_CAP = 512


def _round_up(x, m):
    return ((x + m - 1) // m) * m


def _pick_tile_m(m, cap=_TILE_M_CAP):
    """Fixed 8-aligned M tile; small problems get a single (padded) tile."""
    if m <= cap:
        return _round_up(max(m, _SUBLANES), _SUBLANES)
    return cap


def _controller_kernel(xr_ref, w_ref, b_ref, out_ref, *, n_sigmoid):
    """out = masked_sigmoid(xr @ W + b), lane-padded output.

    Columns [0, n_sigmoid) -> sigmoid (data-structure instructions u, d, v);
    remaining columns      -> linear  (controller output y + zero padding).
    The sigmoid/select only touches the first 128-lane block (n_sigmoid <= 128).
    """
    xr = xr_ref[...].astype(w_ref.dtype)                              # (TM, K)
    h = jnp.dot(xr, w_ref[...], preferred_element_type=jnp.float32)   # (TM, N_pad)
    h = h + b_ref[...].astype(jnp.float32)

    n_pad = h.shape[-1]
    head = h[:, :_LANES]                                              # (TM, 128)
    col = jax.lax.broadcasted_iota(jnp.int32, head.shape, dimension=1)
    head = jnp.where(col < n_sigmoid, jax.nn.sigmoid(head), head)

    if n_pad > _LANES:
        # Two lane-aligned (multiples of 128) unmasked stores.
        out_ref[:, :_LANES] = head.astype(out_ref.dtype)
        out_ref[:, _LANES:] = h[:, _LANES:].astype(out_ref.dtype)
    else:
        out_ref[...] = head.astype(out_ref.dtype)


def _controller_pallas_flat(xr, w, b_pad, *, n_sigmoid):
    """Flattened forward.  xr: (M_pad, K) -> (M_pad, n_pad), f32."""
    m_pad, k = xr.shape
    n_pad = w.shape[-1]
    tile_m = _pick_tile_m(m_pad)
    assert m_pad % tile_m == 0
    grid = (m_pad // tile_m,)

    itemsize = lambda a: jnp.dtype(a.dtype).itemsize
    cost = pl.CostEstimate(
        flops=2 * m_pad * k * n_pad,
        transcendentals=m_pad * _LANES,
        bytes_accessed=(xr.size * itemsize(xr) + w.size * itemsize(w)
                        + b_pad.size * itemsize(b_pad) + m_pad * n_pad * 4),
    )

    kernel = functools.partial(_controller_kernel, n_sigmoid=n_sigmoid)
    return pl.pallas_call(
        kernel,
        out_shape=jax.ShapeDtypeStruct((m_pad, n_pad), jnp.float32),
        grid=grid,
        in_specs=[
            # Streamed activation rows (one big M tile per grid step).
            pl.BlockSpec((tile_m, k), lambda i: (i, 0)),
            # Parameters: constant block index -> DMA'd once, VMEM-resident.
            pl.BlockSpec((k, n_pad), lambda i: (0, 0)),
            pl.BlockSpec((1, n_pad), lambda i: (0, 0)),
        ],
        out_specs=pl.BlockSpec((tile_m, n_pad), lambda i: (i, 0)),
        compiler_params=pltpu.CompilerParams(
            dimension_semantics=("parallel",),
            # Even double-buffered 512x128 f32 blocks are < 1 MiB; 32 MiB leaves
            # ample headroom under v7x's 64 MiB physical VMEM.
            vmem_limit_bytes=32 * 1024 * 1024,
        ),
        cost_estimate=cost,
    )(xr, w, b_pad)


def prepare_params(weight, bias, *, param_dtype=jnp.float32):
    """Lane-pad the stacked (I+R, total_out) weight / bias output dimension to
    a multiple of 128 (zero padding).  Do this once per model.
    Note: param_dtype=bfloat16 downcasts activations before the dot and will
    not meet a 1e-5 tolerance against an f32 reference."""
    total_in, total_out = weight.shape
    n_pad = _round_up(max(total_out, _LANES), _LANES)
    w_pad = jnp.zeros((total_in, n_pad), param_dtype)
    w_pad = w_pad.at[:, :total_out].set(weight.astype(param_dtype))
    b_pad = jnp.zeros((1, n_pad), param_dtype)
    b_pad = b_pad.at[0, :total_out].set(bias.astype(param_dtype))
    return w_pad, b_pad


def controller_forward_seq(x_seq, r_seq, w_pad, b_pad, *, read_size, output_size):
    """Fused-over-timesteps forward: x_seq (T,B,I), r_seq (T,B,R).
    Returns (y, (v, u, d)) with leading (T, B) axes."""
    T, B, I = x_seq.shape
    R = r_seq.shape[-1]
    n_sig = 2 + read_size
    total_out = n_sig + output_size

    # Flatten T*B into one M axis and concatenate [x, r] (K = I+R is tiny).
    m = T * B
    xr = jnp.concatenate(
        [x_seq.reshape(m, I), r_seq.reshape(m, R)], axis=-1).astype(jnp.float32)

    # Pad M up to a multiple of the (8-aligned) tile; padded rows are ignored.
    tile_m = _pick_tile_m(m)
    m_pad = _round_up(m, tile_m)
    if m_pad != m:
        xr = jnp.pad(xr, ((0, m_pad - m), (0, 0)))

    h = _controller_pallas_flat(xr, w_pad, b_pad, n_sigmoid=n_sig)
    h = h[:m].reshape(T, B, -1)

    u = h[..., 0]                    # pop strength      (T, B)
    d = h[..., 1]                    # push strength     (T, B)
    v = h[..., 2:n_sig]              # pushed vector     (T, B, read_size)
    y = h[..., n_sig:total_out]      # controller output (T, B, output_size)
    return y, (v, u, d)


def controller_forward(x, r, w_pad, b_pad, *, read_size, output_size):
    """Single-step Controller.forward(x, r) -> (y, (v, u, d)), matching the
    PyTorch return convention.  Implemented as T=1 of the fused path."""
    y, (v, u, d) = controller_forward_seq(
        x[None], r[None], w_pad, b_pad,
        read_size=read_size, output_size=output_size)
    return y[0], (v[0], u[0], d[0])


def init_params(key, input_size, read_size, output_size):
    """Deterministic init mirroring Controller.init_normal:
    normal(0, 1/sqrt(n)) with n = leading dim of the PyTorch parameter."""
    total_in = input_size + read_size
    total_out = 2 + read_size + output_size
    kw, kb = jax.random.split(key)
    # PyTorch weight is (out, in) with n = out; store transposed (in, out) for xr @ W.
    w_pt = jax.random.normal(kw, (total_out, total_in), jnp.float32) / np.sqrt(total_out)
    weight = w_pt.T
    bias = jax.random.normal(kb, (total_out,), jnp.float32) / np.sqrt(total_out)
    return weight, bias


if __name__ == "__main__":
    T = 8            # timesteps fused into the flattened M axis
    batch = 2
    input_size = 8
    read_size = 4
    output_size = 6
    n_sig = 2 + read_size

    key = jax.random.PRNGKey(0)
    kx, kr, kp = jax.random.split(key, 3)
    x_seq = jax.random.normal(kx, (T, batch, input_size), jnp.float32)
    r_seq = jax.random.normal(kr, (T, batch, read_size), jnp.float32)
    weight, bias = init_params(kp, input_size, read_size, output_size)
    w_pad, b_pad = prepare_params(weight, bias)

    # Sequence-fused path: one flattened M = T*B grid, weights VMEM-resident.
    y, (v, u, d) = controller_forward_seq(
        x_seq, r_seq, w_pad, b_pad,
        read_size=read_size, output_size=output_size)
    jax.block_until_ready((y, v, u, d))

    # Plain-JAX reference (same math as the PyTorch linear controller).
    xr = jnp.concatenate([x_seq, r_seq], axis=-1)
    h_ref = xr @ weight + bias
    h_ref = jnp.concatenate(
        [jax.nn.sigmoid(h_ref[..., :n_sig]), h_ref[..., n_sig:]], axis=-1)
    np.testing.assert_allclose(np.asarray(u), np.asarray(h_ref[..., 0]), rtol=1e-5, atol=1e-5)
    np.testing.assert_allclose(np.asarray(d), np.asarray(h_ref[..., 1]), rtol=1e-5, atol=1e-5)
    np.testing.assert_allclose(np.asarray(v), np.asarray(h_ref[..., 2:n_sig]), rtol=1e-5, atol=1e-5)
    np.testing.assert_allclose(np.asarray(y), np.asarray(h_ref[..., n_sig:]), rtol=1e-5, atol=1e-5)
    assert y.shape == (T, batch, output_size)
    assert v.shape == (T, batch, read_size)
    assert u.shape == (T, batch) and d.shape == (T, batch)

    # Single-step API (PyTorch Controller.forward signature).
    y1, (v1, u1, d1) = controller_forward(
        x_seq[0], r_seq[0], w_pad, b_pad,
        read_size=read_size, output_size=output_size)
    jax.block_until_ready((y1, v1, u1, d1))
    np.testing.assert_allclose(np.asarray(y1), np.asarray(h_ref[0, :, n_sig:]),
                               rtol=1e-5, atol=1e-5)
    np.testing.assert_allclose(np.asarray(u1), np.asarray(h_ref[0, :, 0]),
                               rtol=1e-5, atol=1e-5)
    assert y1.shape == (batch, output_size)
    assert v1.shape == (batch, read_size)
    assert u1.shape == (batch,) and d1.shape == (batch,)

    print("KERNEL_OK")
</pallas_src>

<mosaic_0001>
module attributes {stable_mosaic.version = 11 : i64} {
  func.func @_controller_kernel(%arg0: i32, %arg1: memref<16x12xf32, #tpu.memory_space<vmem>>, %arg2: memref<12x128xf32, #tpu.memory_space<vmem>>, %arg3: memref<1x128xf32, #tpu.memory_space<vmem>>, %arg4: memref<16x128xf32, #tpu.memory_space<vmem>>) attributes {dimension_semantics = [#tpu.dimension_semantics<parallel>], iteration_bounds = array<i64: 1>, scalar_prefetch = 0 : i64, scratch_operands = 0 : i64, tpu.core_type = #tpu.core_type<tc>, window_params = [{transform_indices = @transform_0, window_bounds = array<i64: 16, 12>}, {pipeline_mode = #tpu.pipeline_mode<synchronous>, transform_indices = @transform_1, window_bounds = array<i64: 12, 128>}, {pipeline_mode = #tpu.pipeline_mode<synchronous>, transform_indices = @transform_2, window_bounds = array<i64: 1, 128>}, {transform_indices = @transform_3, window_bounds = array<i64: 16, 128>}]} {
    %c0 = arith.constant 0 : index
    %c0_0 = arith.constant 0 : index
    %0 = vector.load %arg1[%c0, %c0_0] : memref<16x12xf32, #tpu.memory_space<vmem>>, vector<16x12xf32>
    %c0_1 = arith.constant 0 : index
    %c0_2 = arith.constant 0 : index
    %1 = vector.load %arg2[%c0_1, %c0_2] : memref<12x128xf32, #tpu.memory_space<vmem>>, vector<12x128xf32>
    %cst = arith.constant dense<0.000000e+00> : vector<16x128xf32>
    %2 = tpu.matmul %0, %1, %cst {dimension_numbers = #tpu.dot_dimension_numbers<[1], [0], [0], [1], [0, 0, 1, 1], [], []>} : vector<16x12xf32>, vector<12x128xf32>, vector<16x128xf32> -> vector<16x128xf32>
    %c0_3 = arith.constant 0 : index
    %c0_4 = arith.constant 0 : index
    %3 = vector.load %arg3[%c0_3, %c0_4] : memref<1x128xf32, #tpu.memory_space<vmem>>, vector<1x128xf32>
    %4 = vector.broadcast %3 : vector<1x128xf32> to vector<16x128xf32>
    %5 = arith.addf %2, %4 : vector<16x128xf32>
    %6 = tpu.iota {dimensions = array<i32: 1>} : vector<16x128xi32>
    %c6_i32 = arith.constant 6 : i32
    %7 = vector.broadcast %c6_i32 : i32 to vector<16x128xi32>
    %8 = arith.cmpi slt, %6, %7 : vector<16x128xi32>
    %9 = arith.negf %5 : vector<16x128xf32>
    %10 = math.exp %9 : vector<16x128xf32>
    %cst_5 = arith.constant 1.000000e+00 : f32
    %11 = vector.broadcast %cst_5 : f32 to vector<16x128xf32>
    %12 = arith.addf %11, %10 : vector<16x128xf32>
    %13 = arith.divf %11, %12 : vector<16x128xf32>
    %14 = arith.select %8, %13, %5 : vector<16x128xi1>, vector<16x128xf32>
    %c0_6 = arith.constant 0 : index
    %c0_7 = arith.constant 0 : index
    %15 = vector.load %arg4[%c0_6, %c0_7] : memref<16x128xf32, #tpu.memory_space<vmem>>, vector<16x128xf32>
    tpu.vector_store %arg4[%c0_6, %c0_7], %14 {strides = array<i32>} : memref<16x128xf32, #tpu.memory_space<vmem>>, vector<16x128xf32>,
    return
  }
  func.func @transform_0(%arg0: i32) -> (i32, i32) {
    %c0_i32 = arith.constant 0 : i32
    %c0_i32_0 = arith.constant 0 : i32
    return %arg0, %c0_i32 : i32, i32
  }
  func.func @transform_1(%arg0: i32) -> (i32, i32) {
    %c0_i32 = arith.constant 0 : i32
    %c0_i32_0 = arith.constant 0 : i32
    %c0_i32_1 = arith.constant 0 : i32
    return %c0_i32, %c0_i32_0 : i32, i32
  }
  func.func @transform_2(%arg0: i32) -> (i32, i32) {
    %c0_i32 = arith.constant 0 : i32
    %c0_i32_0 = arith.constant 0 : i32
    %c0_i32_1 = arith.constant 0 : i32
    return %c0_i32, %c0_i32_0 : i32, i32
  }
  func.func @transform_3(%arg0: i32) -> (i32, i32) {
    %c0_i32 = arith.constant 0 : i32
    %c0_i32_0 = arith.constant 0 : i32
    return %arg0, %c0_i32 : i32, i32
  }
}

</mosaic_0001>

<bundles_post_ra>
// kernel: tpu_custom_call.1
= control target key start
LH: loop header
LB: loop body
LE: loop exit
PB: predicated region body
PF: predicated region fallthrough
CT: control target
= control target key end

     0   :  { %8 = vsyncpa [#allocation3], 0  ;;  %s360_s0 = inlined_call_operand.hbm [shape: f32[16,12], index: 0, kind: input, shape index: {}]   ;;  %s361_s1 = inlined_call_operand.hbm [shape: f32[12,128], index: 1, kind: input, shape index: {}]   ;;  %s362_s2 = inlined_call_operand.vmem [shape: f32[1,128], index: 2, kind: input, shape index: {}]   ;;  %s363_s3 = inlined_call_operand.hbm [shape: f32[16,128], index: 3, kind: output, shape index: {}]  }
   0x1   :  { %9 = vsyncpa [#allocation6], 0 }
   0x2   :  { %10 = vsyncpa [#allocation4], 0  ;;  %s286_s12 = smov [#allocation2]   ;;  %s214_s16 = scalar_lea.hbm %s360_s0, 256 }
   0x3   :  { %s16_s13 = sshll.u32 %s286_s12, 4  ;;  %p215_p0 = scmp.ne.s32.totalorder %s360_s0, %s214_s16  ;;  %s17_s13 = int_to_ptr.vmem [resolvable:$true] %s16_s13 }
   0x4   :  { %p218_p1 = scmp.lt.u32.totalorder %s214_s16, %s360_s0 }
   0x6   :  { %p220_p2 = pnand %p218_p1, %p215_p0 }
   0x8   :  { %223 = shalt.err (!%p220_p2)
}
   0x9   :  { %s224_s21 = scalar_lea.vmem %s17_s13, 256  ;;  %p229_p4 = scmp.lt.s32.totalorder %s17_s13, %s17_s13 }
   0xa   :  { %p225_p3 = scmp.ne.s32.totalorder %s17_s13, %s224_s21  ;;  %p230_p5 = scmp.lt.s32.totalorder %s224_s21, %s224_s21 }
   0xc   :  { %p231_p6 = por %p230_p5, %p229_p4 }
   0xe   :  { %p232_p7 = pnand %p231_p6, %p225_p3 }
  0x10   :  { %235 = shalt.err (!%p232_p7)
}
  0x11   :  { %s287_s22 = smov 128   ;;  %s288_s23 = smov 8  }
  0x12   :  { %22 = dma.hbm_to_vmem [thread:$0]  %s360_s0, 256, %s17_s13, [#allocation3], %s287_s22, %s287_s22, %s288_s23  }
  0x13   :  { %s289_s26 = smov [#allocation5]   ;;  %s236_s30 = scalar_lea.hbm %s361_s1, 256 }
  0x14   :  { %s28_s27 = sshll.u32 %s289_s26, 4  ;;  %p237_p8 = scmp.ne.s32.totalorder %s361_s1, %s236_s30  ;;  %s29_s27 = int_to_ptr.vmem [resolvable:$true] %s28_s27 }
  0x15   :  { %p240_p9 = scmp.lt.u32.totalorder %s236_s30, %s361_s1 }
  0x17   :  { %p242_p10 = pnand %p240_p9, %p237_p8 }
  0x19   :  { %245 = shalt.err (!%p242_p10)
}
  0x1a   :  { %s246_s8 = scalar_lea.vmem %s29_s27, 256  ;;  %p251_p12 = scmp.lt.s32.totalorder %s29_s27, %s29_s27 }
  0x1b   :  { %p247_p11 = scmp.ne.s32.totalorder %s29_s27, %s246_s8  ;;  %p252_p13 = scmp.lt.s32.totalorder %s246_s8, %s246_s8 }
  0x1d   :  { %p253_p0 = por %p252_p13, %p251_p12 }
  0x1f   :  { %p254_p1 = pnand %p253_p0, %p247_p11 }
  0x21   :  { %257 = shalt.err (!%p254_p1)
}
  0x22   :  { %34 = dma.hbm_to_vmem [thread:$0]  %s361_s1, 256, %s29_s27, [#allocation6], %s287_s22, %s287_s22, %s288_s23  }
  0x23   :  { %280 = dma.done.wait [#allocation3], 256  }
  0x24   :  { %281 = vsyncadd [#allocation3], 4294967040 }
  0x25   :  { %282 = dma.done.wait [#allocation6], 256  }
  0x26   :  { %283 = vsyncadd [#allocation6], 4294967040  ;;  %vm61_vm0 = vcmask 1043456   ;;  %vm54_vm1 = vcmask 97280   ;;  %vm290_vm2 = vmmov 1   ;;  %v45_v0 = vld [vmem:[#allocation5] sm:$0xff]  ;;  %v140_v16 = vlaneseq }
  0x27   :  { %vm195_vm3 = vmpackc.low %vm61_vm0, %vm290_vm2  ;;  %v46_v1 = vld [vmem:[#allocation5 + $0x8] sm:$0xf]  ;;  %v43_v2 = vld [vmem:[#allocation2] sm:$0xff]  ;;  %s291_s1 = smov [#allocation7]  }
  0x28   :  { %v194_v3 = vpack.c.bf16 %v46_v1, %v45_v0  ;;  %191 = vmatprep.mubr.msk.f32.mxu0 %vm54_vm1, %v43_v2  ;;  %v44_v4 = vld [vmem:[#allocation2 + $0x8] sm:$0xff]  ;;  %v177_v5 = vld [vmem:[%s362_s2] ss:$0 sm:$0xff]  ;;  %v141_v17 = vand.u32 127, %v140_v16  ;;  %s164_s12 = sshll.u32 %s291_s1, 4  ;;  %s165_s12 = int_to_ptr.vmem [resolvable:$true] %s164_s12 }
  0x29   :  { %s258_s2 = scalar_lea.vmem %s165_s12, 256  ;;  %p263_p3 = scmp.lt.s32.totalorder %s165_s12, %s165_s12 }
  0x2a   :  { %196 = vmatprep.subr.msk.bf16.mxu0 %vm195_vm3, %v194_v3  ;;  %vm142_vm4 = vcmp.lt.s32.totalorder %v141_v17, 6  ;;  %p259_p2 = scmp.ne.s32.totalorder %s165_s12, %s258_s2  ;;  %p264_p4 = scmp.lt.s32.totalorder %s258_s2, %s258_s2 }
  0x2b   :  { %199 = vmatpush3.bf16.msk.msra.mxu0 %vm195_vm3, %v194_v3 }
  0x2c   :  { %p265_p5 = por %p264_p4, %p263_p3 }
  0x2e   :  { %192 = vmatmul.mubr.msk.f32.vlgmr.msra.gmra.mrb[0].mxu0 %vm54_vm1, %v44_v4  ;;  %p266_p6 = pnand %p265_p5, %p259_p2 }
 0x101   :  { %v193_v6 = vpop.f32.mrb[0].mxu0 }
 0x102   :  { %v137_v7 = vadd.f32 %v193_v6, %v177_v5  ;;  %v131_v8 = vpop.f32.mrb[1].mxu0 }
 0x103   :  { %v132_v9 = vadd.f32 %v177_v5, %v131_v8 }
 0x104   :  { %v182_v10 = vmul.f32 -1.442695, %v137_v7 }
 0x105   :  { %v181_v11 = vmul.f32 -1.442695, %v132_v9 }
 0x106   :  { %206 = vpow2.f32 %v182_v10 }
 0x107   :  { %208 = vpow2.f32 %v181_v11 }
 0x110   :  { %v207_v12 = vpop.eup %206 }
 0x111   :  { %v209_v13 = vpop.eup %208  ;;  %v150_v14 = vadd.f32 1.0, %v207_v12 }
 0x112   :  { %v149_v15 = vadd.f32 1.0, %v209_v13 }
 0x113   :  { %210 = vrcp.f32 %v150_v14 }
 0x114   :  { %212 = vrcp.f32 %v149_v15 }
 0x11d   :  { %v211_v18 = vpop.eup %210 }
 0x11e   :  { %v213_v19 = vpop.eup %212  ;;  %v156_v20 = vsel %vm142_vm4, %v211_v18, %v137_v7 }
 0x11f   :  { %v155_v21 = vsel %vm142_vm4, %v213_v19, %v132_v9  ;;  %158 = vst [vmem:[#allocation7 + $0x8] sm:$0xff] %v156_v20 }
 0x120   :  { %157 = vst [vmem:[#allocation7] sm:$0xff] %v155_v21 }
 0x121   :  { %269 = shalt.err (!%p266_p6)
}
 0x122   :  { %s270_s15 = scalar_lea.hbm %s363_s3, 256 }
 0x123   :  { %p271_p7 = scmp.ne.s32.totalorder %s363_s3, %s270_s15  ;;  %p274_p8 = scmp.lt.u32.totalorder %s270_s15, %s363_s3 }
 0x125   :  { %p276_p9 = pnand %p274_p8, %p271_p7 }
 0x127   :  { %279 = shalt.err (!%p276_p9)
}
 0x128   :  { %170 = dma.vmem_to_hbm [thread:$0]  %s165_s12, 256, %s363_s3, [#allocation4], %s287_s22, %s287_s22, %s288_s23  }
 0x129   :  { %284 = dma.done.wait [#allocation4], 256  }
 0x12a   :  { %285 = vsyncadd [#allocation4], 4294967040 }
 0x12b   :  { %174 = vsyncpa [#allocation3], 1 }
 0x12c   :  { %175 = vsyncpa [#allocation6], 1 }
 0x12d   :  { %176 = vsyncpa [#allocation4], 1 }

</bundles_post_ra>
